<compile_context>
chip_gen: v7x
topology: tpu7x:2x2x1
jax: 0.10.0
libtpu: 0.0.40
codegen_flags: <defaults>
</compile_context>

<pallas_src>
import math

import jax
import jax.numpy as jnp
from jax.experimental import pallas as pl
from jax.experimental.pallas import tpu as pltpu

_LANE = 128
_SUBLANE = 8
_TARGET_BLOCK_BYTES = 2 * 1024 * 1024   # ~2 MiB per block (all generations)
_MAX_TILE_F = 4096                      # lane-dense upper bound for col tiles


def _droppath_kernel(scale_ref, x_ref, o_ref):
    # scale_ref: (row_block, 1) f32; x_ref / o_ref: (row_block, tile_f).
    x = x_ref[...].astype(jnp.float32)
    o_ref[...] = (x * scale_ref[...]).astype(o_ref.dtype)


def _round_up(v, m):
    return ((v + m - 1) // m) * m


def drop_path(x, drop_prob, seed, training=True):
    """Stochastic depth per sample. x: (B, ...) e.g. NCHW. Same shape/dtype out."""
    if drop_prob == 0.0 or not training:
        return x

    keep_prob = 1.0 - float(drop_prob)
    b = x.shape[0]
    feat = math.prod(x.shape[1:])

    # Per-sample mask/scale, computed once (never per grid step):
    #   scale = floor(keep_prob + U[0,1)) / keep_prob   in {0, 1/keep_prob}
    key = jax.random.PRNGKey(seed)
    u = jax.random.uniform(key, (b, 1), dtype=jnp.float32)
    scale = jnp.floor(keep_prob + u) * (1.0 / keep_prob)          # (B, 1) f32

    itemsize = jnp.dtype(x.dtype).itemsize
    sub_target = {4: 8, 2: 16, 1: 32}.get(itemsize, 8)

    # Fold small batches onto the sublane axis *without padding*: sample i owns
    # rows [i*rep, (i+1)*rep) of the (b*rep, feat//rep) slab. Legal only when
    # feat % (rep*128) == 0 so columns remain a 128-multiple.
    rep = 1
    if b < sub_target:
        best = 1
        for cand in (2, 4, 8, 16, 32):
            if feat % (cand * _LANE) == 0:
                best = cand
                if b * cand >= sub_target:
                    break
        rep = best
    b_eff = b * rep
    feat_eff = feat // rep

    x2d = x.reshape(b_eff, feat_eff)                              # reshape only
    if rep > 1:
        scale = jnp.repeat(scale, rep, axis=0)                    # (b_eff, 1)

    # Byte-targeted block sizing (~2 MiB per block).
    tile_f = min(_round_up(feat_eff, _LANE), _MAX_TILE_F)
    if tile_f >= feat_eff:
        tile_f = feat_eff           # single full-width block (== full dim: legal)
    target_elems = max(1, _TARGET_BLOCK_BYTES // itemsize)
    row_block = max(_SUBLANE, (target_elems // max(tile_f, 1)) // _SUBLANE * _SUBLANE)
    if row_block >= b_eff:
        row_block = b_eff           # full batch per block (== full dim: legal)

    grid = (pl.cdiv(b_eff, row_block), pl.cdiv(feat_eff, tile_f))

    out2d = pl.pallas_call(
        _droppath_kernel,
        out_shape=jax.ShapeDtypeStruct((b_eff, feat_eff), x.dtype),
        grid=grid,
        in_specs=[
            pl.BlockSpec((row_block, 1), lambda i, j: (i, 0)),        # scale
            pl.BlockSpec((row_block, tile_f), lambda i, j: (i, j)),   # x tile
        ],
        out_specs=pl.BlockSpec((row_block, tile_f), lambda i, j: (i, j)),
        compiler_params=pltpu.CompilerParams(
            dimension_semantics=("parallel", "parallel")),
    )(scale, x2d)

    return out2d.reshape(x.shape)


if __name__ == "__main__":
    def _check(x, out, keep_prob):
        x2d = x.reshape(x.shape[0], -1)
        o2d = out.reshape(out.shape[0], -1)
        for i in range(x.shape[0]):
            row = o2d[i]
            is_zero = bool(jnp.all(row == 0.0))
            is_scaled = bool(jnp.allclose(row, x2d[i] / keep_prob,
                                          rtol=1e-6, atol=1e-6))
            assert is_zero or is_scaled, "per-sample DropPath semantics violated"

    drop_prob = 0.25
    keep_prob = 1.0 - drop_prob
    key = jax.random.PRNGKey(0)

    # B=2, C=4, H=W=16 (NCHW): feat is a 128-multiple -> sublane fold, no edge.
    x = jax.random.normal(key, (2, 4, 16, 16), dtype=jnp.float32)
    out = jax.block_until_ready(drop_path(x, drop_prob, seed=1234, training=True))
    _check(x, out, keep_prob)

    # Ragged feature count (3*7*7 = 147, not a 128-multiple): exercises the
    # no-pad full-dim / masked-edge path.
    xr = jax.random.normal(jax.random.PRNGKey(1), (3, 3, 7, 7), dtype=jnp.float32)
    outr = jax.block_until_ready(drop_path(xr, drop_prob, seed=77, training=True))
    _check(xr, outr, keep_prob)

    # Eval / drop_prob == 0 path returns the input unchanged.
    out_eval = jax.block_until_ready(
        drop_path(x, drop_prob, seed=1234, training=False))
    assert bool(jnp.all(out_eval == x))

    print("KERNEL_OK")
</pallas_src>

<mosaic_0001>
module attributes {stable_mosaic.version = 11 : i64} {
  func.func @_droppath_kernel(%arg0: i32, %arg1: i32, %arg2: memref<8x1xf32, #tpu.memory_space<vmem>>, %arg3: memref<8x256xf32, #tpu.memory_space<vmem>>, %arg4: memref<8x256xf32, #tpu.memory_space<vmem>>) attributes {dimension_semantics = [#tpu.dimension_semantics<parallel>, #tpu.dimension_semantics<parallel>], iteration_bounds = array<i64: 1, 1>, scalar_prefetch = 0 : i64, scratch_operands = 0 : i64, tpu.core_type = #tpu.core_type<tc>, window_params = [{transform_indices = @transform_0, window_bounds = array<i64: 8, 1>}, {transform_indices = @transform_1, window_bounds = array<i64: 8, 256>}, {transform_indices = @transform_2, window_bounds = array<i64: 8, 256>}]} {
    %c0 = arith.constant 0 : index
    %c0_0 = arith.constant 0 : index
    %0 = vector.load %arg3[%c0, %c0_0] : memref<8x256xf32, #tpu.memory_space<vmem>>, vector<8x256xf32>
    %c0_1 = arith.constant 0 : index
    %c0_2 = arith.constant 0 : index
    %1 = vector.load %arg2[%c0_1, %c0_2] : memref<8x1xf32, #tpu.memory_space<vmem>>, vector<8x1xf32>
    %2 = vector.broadcast %1 : vector<8x1xf32> to vector<8x256xf32>
    %3 = arith.mulf %0, %2 : vector<8x256xf32>
    %c0_3 = arith.constant 0 : index
    %c0_4 = arith.constant 0 : index
    %4 = vector.load %arg4[%c0_3, %c0_4] : memref<8x256xf32, #tpu.memory_space<vmem>>, vector<8x256xf32>
    tpu.vector_store %arg4[%c0_3, %c0_4], %3 {strides = array<i32>} : memref<8x256xf32, #tpu.memory_space<vmem>>, vector<8x256xf32>,
    return
  }
  func.func @transform_0(%arg0: i32, %arg1: i32) -> (i32, i32) {
    %c0_i32 = arith.constant 0 : i32
    %c0_i32_0 = arith.constant 0 : i32
    return %arg0, %c0_i32 : i32, i32
  }
  func.func @transform_1(%arg0: i32, %arg1: i32) -> (i32, i32) {
    %c0_i32 = arith.constant 0 : i32
    return %arg0, %arg1 : i32, i32
  }
  func.func @transform_2(%arg0: i32, %arg1: i32) -> (i32, i32) {
    %c0_i32 = arith.constant 0 : i32
    return %arg0, %arg1 : i32, i32
  }
}

</mosaic_0001>

<bundles_post_ra>
// kernel: tpu_custom_call.1
= control target key start
LH: loop header
LB: loop body
LE: loop exit
PB: predicated region body
PF: predicated region fallthrough
CT: control target
= control target key end

     0   :  { %7 = vsyncpa [#allocation3], 0  ;;  %s148_s0 = inlined_call_operand.vmem [shape: f32[8,1], index: 0, kind: input, shape index: {}]   ;;  %s149_s1 = inlined_call_operand.hbm [shape: f32[8,256], index: 1, kind: input, shape index: {}]   ;;  %s150_s2 = inlined_call_operand.hbm [shape: f32[8,256], index: 2, kind: output, shape index: {}]  }
   0x1   :  { %8 = vsyncpa [#allocation4], 0  ;;  %s103_s9 = smov [#allocation2]   ;;  %s55_s13 = scalar_lea.hbm %s149_s1, 256 }
   0x2   :  { %s17_s10 = sshll.u32 %s103_s9, 4  ;;  %p56_p0 = scmp.ne.s32.totalorder %s149_s1, %s55_s13  ;;  %s18_s10 = int_to_ptr.vmem [resolvable:$true] %s17_s10 }
   0x3   :  { %p59_p1 = scmp.lt.u32.totalorder %s55_s13, %s149_s1 }
   0x5   :  { %p61_p2 = pnand %p59_p1, %p56_p0 }
   0x7   :  { %64 = shalt.err (!%p61_p2)
}
   0x8   :  { %s65_s18 = scalar_lea.vmem %s18_s10, 256  ;;  %p70_p4 = scmp.lt.s32.totalorder %s18_s10, %s18_s10 }
   0x9   :  { %p66_p3 = scmp.ne.s32.totalorder %s18_s10, %s65_s18  ;;  %p71_p5 = scmp.lt.s32.totalorder %s65_s18, %s65_s18 }
   0xb   :  { %p72_p6 = por %p71_p5, %p70_p4 }
   0xd   :  { %p73_p7 = pnand %p72_p6, %p66_p3 }
   0xf   :  { %76 = shalt.err (!%p73_p7)
}
  0x10   :  { %20 = dma.hbm_to_vmem [thread:$0]  %s149_s1, 256, %s18_s10, [#allocation3]  }
  0x11   :  { %99 = dma.done.wait [#allocation3], 256  }
  0x12   :  { %100 = vsyncadd [#allocation3], 4294967040  ;;  %v104_v0 = vmov 0   ;;  %v26_v1 = vld [vmem:[%s148_s0] sm:$0xff]  ;;  %v25_v3 = vld [vmem:[#allocation2 + $0x8] sm:$0xff]  ;;  %s105_s23 = smov [#allocation5]  }
  0x13   :  { %54 = vset.pattern.permute.xlu0 %v104_v0  ;;  %v24_v2 = vld [vmem:[#allocation2] sm:$0xff]  ;;  %s42_s24 = sshll.u32 %s105_s23, 4  ;;  %s43_s24 = int_to_ptr.vmem [resolvable:$true] %s42_s24 }
  0x14   :  { %29 = vperm.xlu0 %54, %v26_v1   ;;  %s77_s1 = scalar_lea.vmem %s43_s24, 256  ;;  %p82_p9 = scmp.lt.s32.totalorder %s43_s24, %s43_s24 }
  0x15   :  { %p78_p8 = scmp.ne.s32.totalorder %s43_s24, %s77_s1  ;;  %p83_p10 = scmp.lt.s32.totalorder %s77_s1, %s77_s1 }
  0x17   :  { %p84_p11 = por %p83_p10, %p82_p9 }
  0x19   :  { %p85_p12 = pnand %p84_p11, %p78_p8 }
  0x93   :  { %v30_v4 = vpop.permute.xlu0 %29 }
  0x94   :  { %v32_v5 = vmul.f32 %v30_v4, %v24_v2  ;;  %v33_v6 = vmul.f32 %v30_v4, %v25_v3 }
  0x96   :  { %34 = vst [vmem:[#allocation5] sm:$0xff] %v32_v5  ;;  %35 = vst [vmem:[#allocation5 + $0x8] sm:$0xff] %v33_v6 }
  0x97   :  { %88 = shalt.err (!%p85_p12)
}
  0x98   :  { %s89_s26 = scalar_lea.hbm %s150_s2, 256 }
  0x99   :  { %p90_p13 = scmp.ne.s32.totalorder %s150_s2, %s89_s26  ;;  %p93_p0 = scmp.lt.u32.totalorder %s89_s26, %s150_s2 }
  0x9b   :  { %p95_p1 = pnand %p93_p0, %p90_p13 }
  0x9d   :  { %98 = shalt.err (!%p95_p1)
}
  0x9e   :  { %45 = dma.vmem_to_hbm [thread:$0]  %s43_s24, 256, %s150_s2, [#allocation4]  }
  0x9f   :  { %101 = dma.done.wait [#allocation4], 256  }
  0xa0   :  { %102 = vsyncadd [#allocation4], 4294967040 }
  0xa1   :  { %49 = vsyncpa [#allocation3], 1 }
  0xa2   :  { %50 = vsyncpa [#allocation4], 1 }

</bundles_post_ra>
